<compile_context>
chip_gen: v6e
topology: v6e:2x2x1
jax: 0.10.0
libtpu: 0.0.40
codegen_flags: <defaults>
</compile_context>

<pallas_src>
import jax
import jax.numpy as jnp
from jax.experimental import pallas as pl
from jax.experimental.pallas import tpu as pltpu


# --------------------------------------------------------------------------
# Kernels
# --------------------------------------------------------------------------
def _cross_packed_kernel(x0_ref, xi_ref, params_ref, seg_ref, y_ref):
    # x0/xi/y: (TB, 128)   params: (2, 128) = [w_tiled; bias_tiled]
    # seg:     (128, 128)  block-diagonal ones (segment-sum matrix)
    x0 = x0_ref[...].astype(jnp.float32)
    xi = xi_ref[...].astype(jnp.float32)
    w = params_ref[0:1, :].astype(jnp.float32)
    b = params_ref[1:2, :].astype(jnp.float32)
    # Per-original-row dot, computed as one small MXU matmul so the result is
    # already broadcast across each D-lane segment (keeps everything 128-lane
    # dense -> unmasked stores).  HIGHEST precision = exact f32 on the MXU.
    s = jnp.dot(xi * w, seg_ref[...],
                preferred_element_type=jnp.float32,
                precision=jax.lax.Precision.HIGHEST)
    y_ref[...] = (s * x0 + b).astype(y_ref.dtype)


def _cross_plain_kernel(x0_ref, xi_ref, params_ref, y_ref):
    # x0/xi/y: (TB, D)   params: (2, D) = [w; bias]
    x0 = x0_ref[...].astype(jnp.float32)
    xi = xi_ref[...].astype(jnp.float32)
    w = params_ref[0:1, :].astype(jnp.float32)
    b = params_ref[1:2, :].astype(jnp.float32)
    # VPU multiply + XLU lane reduce; avoids a degenerate (D, 1) MXU push.
    s = jnp.sum(xi * w, axis=-1, keepdims=True)  # (TB, 1)
    y_ref[...] = (s * x0 + b).astype(y_ref.dtype)


# --------------------------------------------------------------------------
# Wrapper
# --------------------------------------------------------------------------
def _round_up8(n):
    return ((n + 7) // 8) * 8


def _pick_block_rows(n_rows, width, elem_bytes, target_tile_bytes):
    """Rows per tile: ~target_tile_bytes per input tile, >=4 grid steps when
    the batch allows it (v7x megacore), (8,128) constraint respected."""
    lane_w = max(width, 128)  # sub-128 widths are lane-padded in vregs
    tb = max(8, target_tile_bytes // (lane_w * elem_bytes))
    tb = (tb // 8) * 8
    if n_rows >= 32:
        # Keep the grid >= ~4 steps so the "parallel" axis can split across
        # both TensorCores on v7x (harmless on single-TC v5e/v6e).
        tb = min(tb, _round_up8(pl.cdiv(n_rows, 4)))
    if tb > n_rows:
        tb = (n_rows // 8) * 8 if n_rows >= 8 else n_rows  # full-extent ok
    return max(tb, 1)


def cross_interaction(X_0, X_i, w, bias, *, target_tile_bytes=2 << 20):
    """CrossInteractionLayer forward.

    X_0, X_i : (B, D)
    w        : (1, D)   -- nn.Linear(D, 1, bias=False).weight layout
    bias     : (D,)     -- nn.Parameter(torch.zeros(D))
    returns  : (B, D)
    """
    B, D = X_0.shape
    assert X_i.shape == (B, D)
    w2 = jnp.reshape(w, (1, D))
    b2 = jnp.reshape(bias, (1, D))
    elem = jnp.dtype(X_0.dtype).itemsize

    # Lane-packing path: fold k = 128 // D rows into one 128-lane row so the
    # output is lane-dense (unmasked vst, no 4x lane padding in VMEM).
    pack = (D < 128) and (128 % D == 0) and (B % (128 // D) == 0)
    if pack:
        k = 128 // D
        Dp = 128
        rows = B // k
        x0 = X_0.reshape(rows, Dp)          # contiguous reshape: free
        xi = X_i.reshape(rows, Dp)
        params = jnp.concatenate(
            [jnp.tile(w2, (1, k)), jnp.tile(b2, (1, k))], axis=0
        ).astype(jnp.float32)               # (2, 128)
        lane_seg = jnp.arange(Dp) // D
        seg = (lane_seg[:, None] == lane_seg[None, :]).astype(jnp.float32)
    else:
        Dp = D
        rows = B
        x0, xi = X_0, X_i
        params = jnp.concatenate([w2, b2], axis=0).astype(jnp.float32)  # (2, D)
        seg = None

    tb = _pick_block_rows(rows, Dp, elem, target_tile_bytes)
    grid = (pl.cdiv(rows, tb),)  # last block may be partially OOB -> masked

    # Explicit scoped-VMEM limit sized from the double-buffered footprint,
    # capped below v7x's 64 MiB physical (generous on v5e/v6e's 128 MiB).
    lane_w = max(Dp, 128)
    tile_bytes = tb * lane_w * elem
    footprint = 2 * 3 * tile_bytes + (2 + 128) * lane_w * 4
    vmem_limit = int(min(48 << 20, max(2 * footprint, 16 << 20)))

    cost = pl.CostEstimate(
        flops=6 * B * D,
        transcendentals=0,
        bytes_accessed=3 * B * D * elem + 2 * D * 4,
    )

    in_specs = [
        pl.BlockSpec((tb, Dp), lambda i: (i, 0)),   # X_0 tile
        pl.BlockSpec((tb, Dp), lambda i: (i, 0)),   # X_i tile
        pl.BlockSpec((2, Dp), lambda i: (0, 0)),    # [w; bias], grid-constant
    ]
    operands = [x0, xi, params]
    if pack:
        in_specs.append(pl.BlockSpec((128, 128), lambda i: (0, 0)))  # seg-sum
        operands.append(seg)
        kernel = _cross_packed_kernel
    else:
        kernel = _cross_plain_kernel

    out = pl.pallas_call(
        kernel,
        out_shape=jax.ShapeDtypeStruct((rows, Dp), X_0.dtype),
        grid=grid,
        in_specs=in_specs,
        out_specs=pl.BlockSpec((tb, Dp), lambda i: (i, 0)),
        compiler_params=pltpu.CompilerParams(
            dimension_semantics=("parallel",),
            vmem_limit_bytes=vmem_limit,
        ),
        cost_estimate=cost,
    )(*operands)

    return out.reshape(B, D) if pack else out


def cross_interaction_ref(X_0, X_i, w, bias):
    """Pure-JAX reference mirroring the PyTorch forward."""
    s = X_i @ w.T                     # (B, 1)
    return s * X_0 + bias[None, :]    # (B, D)


# --------------------------------------------------------------------------
# Self-test
# --------------------------------------------------------------------------
if __name__ == "__main__":
    def run_case(B, D, key):
        k0, k1, kw, kb = jax.random.split(key, 4)
        X_0 = jax.random.normal(k0, (B, D), dtype=jnp.float32)
        X_i = jax.random.normal(k1, (B, D), dtype=jnp.float32)
        bound = 1.0 / (D ** 0.5)
        w = jax.random.uniform(kw, (1, D), minval=-bound, maxval=bound,
                               dtype=jnp.float32)
        bias = jax.random.normal(kb, (D,), dtype=jnp.float32) * 0.1

        y = jax.block_until_ready(cross_interaction(X_0, X_i, w, bias))
        y_ref = cross_interaction_ref(X_0, X_i, w, bias)
        assert y.shape == (B, D)
        assert jnp.allclose(y, y_ref, atol=1e-4, rtol=1e-4), \
            f"mismatch vs reference for B={B}, D={D}"

    keys = jax.random.split(jax.random.PRNGKey(0), 3)
    run_case(256, 32, keys[0])   # lane-packed path (k=4), 4-step grid
    run_case(100, 32, keys[1])   # lane-packed path, masked partial last block
    run_case(64, 160, keys[2])   # plain path, D >= 128 (full-extent lane block)

    print("KERNEL_OK")
</pallas_src>

<mosaic_0001>
module attributes {stable_mosaic.version = 11 : i64} {
  func.func @_cross_packed_kernel(%arg0: i32, %arg1: memref<16x128xf32, #tpu.memory_space<vmem>>, %arg2: memref<16x128xf32, #tpu.memory_space<vmem>>, %arg3: memref<2x128xf32, #tpu.memory_space<vmem>>, %arg4: memref<128x128xf32, #tpu.memory_space<vmem>>, %arg5: memref<16x128xf32, #tpu.memory_space<vmem>>) attributes {dimension_semantics = [#tpu.dimension_semantics<parallel>], iteration_bounds = array<i64: 4>, scalar_prefetch = 0 : i64, scratch_operands = 0 : i64, tpu.core_type = #tpu.core_type<tc>, window_params = [{transform_indices = @transform_0, window_bounds = array<i64: 16, 128>}, {transform_indices = @transform_1, window_bounds = array<i64: 16, 128>}, {pipeline_mode = #tpu.pipeline_mode<synchronous>, transform_indices = @transform_2, window_bounds = array<i64: 2, 128>}, {pipeline_mode = #tpu.pipeline_mode<synchronous>, transform_indices = @transform_3, window_bounds = array<i64: 128, 128>}, {transform_indices = @transform_4, window_bounds = array<i64: 16, 128>}]} {
    %c0 = arith.constant 0 : index
    %c0_0 = arith.constant 0 : index
    %0 = vector.load %arg1[%c0, %c0_0] : memref<16x128xf32, #tpu.memory_space<vmem>>, vector<16x128xf32>
    %c0_1 = arith.constant 0 : index
    %c0_2 = arith.constant 0 : index
    %1 = vector.load %arg2[%c0_1, %c0_2] : memref<16x128xf32, #tpu.memory_space<vmem>>, vector<16x128xf32>
    %c0_3 = arith.constant 0 : index
    %c0_4 = arith.constant 0 : index
    %2 = vector.load %arg3[%c0_3, %c0_4] : memref<2x128xf32, #tpu.memory_space<vmem>>, vector<1x128xf32>
    %c1 = arith.constant 1 : index
    %c0_5 = arith.constant 0 : index
    %3 = vector.load %arg3[%c1, %c0_5] : memref<2x128xf32, #tpu.memory_space<vmem>>, vector<1x128xf32>
    %4 = vector.broadcast %2 : vector<1x128xf32> to vector<16x128xf32>
    %5 = arith.mulf %1, %4 : vector<16x128xf32>
    %c0_6 = arith.constant 0 : index
    %c0_7 = arith.constant 0 : index
    %6 = vector.load %arg4[%c0_6, %c0_7] : memref<128x128xf32, #tpu.memory_space<vmem>>, vector<128x128xf32>
    %cst = arith.constant dense<0.000000e+00> : vector<16x128xf32>
    %7 = tpu.matmul %5, %6, %cst {dimension_numbers = #tpu.dot_dimension_numbers<[1], [0], [0], [1], [0, 0, 1, 1], [], []>, precision = #tpu.contract_precision<fp32>} : vector<16x128xf32>, vector<128x128xf32>, vector<16x128xf32> -> vector<16x128xf32>
    %8 = arith.mulf %7, %0 : vector<16x128xf32>
    %9 = vector.broadcast %3 : vector<1x128xf32> to vector<16x128xf32>
    %10 = arith.addf %8, %9 : vector<16x128xf32>
    %c0_8 = arith.constant 0 : index
    %c0_9 = arith.constant 0 : index
    %11 = vector.load %arg5[%c0_8, %c0_9] : memref<16x128xf32, #tpu.memory_space<vmem>>, vector<16x128xf32>
    tpu.vector_store %arg5[%c0_8, %c0_9], %10 {strides = array<i32>} : memref<16x128xf32, #tpu.memory_space<vmem>>, vector<16x128xf32>,
    return
  }
  func.func @transform_0(%arg0: i32) -> (i32, i32) {
    %c0_i32 = arith.constant 0 : i32
    %c0_i32_0 = arith.constant 0 : i32
    return %arg0, %c0_i32 : i32, i32
  }
  func.func @transform_1(%arg0: i32) -> (i32, i32) {
    %c0_i32 = arith.constant 0 : i32
    %c0_i32_0 = arith.constant 0 : i32
    return %arg0, %c0_i32 : i32, i32
  }
  func.func @transform_2(%arg0: i32) -> (i32, i32) {
    %c0_i32 = arith.constant 0 : i32
    %c0_i32_0 = arith.constant 0 : i32
    %c0_i32_1 = arith.constant 0 : i32
    return %c0_i32, %c0_i32_0 : i32, i32
  }
  func.func @transform_3(%arg0: i32) -> (i32, i32) {
    %c0_i32 = arith.constant 0 : i32
    %c0_i32_0 = arith.constant 0 : i32
    %c0_i32_1 = arith.constant 0 : i32
    return %c0_i32, %c0_i32_0 : i32, i32
  }
  func.func @transform_4(%arg0: i32) -> (i32, i32) {
    %c0_i32 = arith.constant 0 : i32
    %c0_i32_0 = arith.constant 0 : i32
    return %arg0, %c0_i32 : i32, i32
  }
}

</mosaic_0001>

<bundles_post_ra>
// kernel: tpu_custom_call.1
= control target key start
LH: loop header
LB: loop body
LE: loop exit
PB: predicated region body
PF: predicated region fallthrough
CT: control target
= control target key end

     0   :  { %s2310_s0 = inlined_call_operand.hbm [shape: f32[64,128], index: 0, kind: input, shape index: {}]   ;;  %s2311_s1 = inlined_call_operand.hbm [shape: f32[64,128], index: 1, kind: input, shape index: {}]   ;;  %s2312_s2 = inlined_call_operand.vmem [shape: f32[2,128], index: 2, kind: input, shape index: {}]   ;;  %s2313_s3 = inlined_call_operand.hbm [shape: f32[128,128], index: 3, kind: input, shape index: {}]   ;;  %s2314_s4 = inlined_call_operand.hbm [shape: f32[64,128], index: 4, kind: output, shape index: {}]  }
   0x1   :  { %2324 = sst [smem:[#allocation14_spill]] %s2310_s0 }
   0x2   :  { %2325 = sst [smem:[#allocation15_spill]] %s2313_s3 }
   0x3   :  { %9 = vsyncpa [#allocation3], 0 }
   0x4   :  { %11 = vsyncpa [#allocation3 + $0x1], 0 }
   0x5   :  { %12 = vsyncpa [#allocation6], 0 }
   0x6   :  { %14 = vsyncpa [#allocation6 + $0x1], 0 }
   0x7   :  { %15 = vsyncpa [#allocation4], 0 }
   0x8   :  { %17 = vsyncpa [#allocation4 + $0x1], 0  ;;  %s1712_s15 = smov 0   ;;  %s1714_s16 = smov 0  }
   0x9   :  { %s1716_s17 = smov 0   ;;  %s1718_s18 = smov 0  }
   0xa LB: > { %s1733_s19 = sadd.s32 4294967295, %s1677_s18   ;;  %s1114_s20 = sadd.s32 4294967294, %s1677_s18   ;;  %s1677_s18 = sphi %s1718_s18, %s2349_s18   ;;  %s1673_s17 = sphi %s1716_s17, %s2348_s17   ;;  %s1669_s16 = sphi %s1714_s16, %s2347_s16   ;;  %s1665_s15 = sphi %s1712_s15, %s2346_s15  }
   0xb   : > { %p43_p0 = scmp.ne.s32.totalorder %s1669_s16, %s1665_s15  ;;  %p2319_p1 = scmp.eq.s32.totalorder %s1733_s19, 0 }
   0xc   : > { %p141_p3 = scmp.eq.s32.totalorder %s1114_s20, 3  ;;  %p1115_p5 = scmp.ge.s32.totalorder %s1677_s18, 1 }
   0xd   : > { %p1742_p4 = por %p2319_p1, %p43_p0  ;;  %p148_p7 = scmp.lt.s32.totalorder %s1677_s18, 5 }
   0xe   : > { %p1747_p6 = por %p141_p3, %p43_p0  ;;  %s1679_s24 = smov [#allocation7]  }
   0xf   : > { %s2326_s21 = scalar_select %p1742_p4, 1, 0 }
  0x10   : > { %s2327_s22 = scalar_select %p1747_p6, 1, 0 }
  0x11   : > { %p1752_p8 = pnand %p1115_p5, %p148_p7  ;;  %s163_s25 = sshll.u32 %s1679_s24, 4  ;;  %s164_s25 = int_to_ptr.vmem [resolvable:$true] %s163_s25 }
  0x12   : > { %s1765_s27 = sadd.s32 1, %s1677_s18   ;;  %s30_s28 = sadd.s32 1, %s1673_s17 }
  0x13   : > { %p1467_p9 = pneg %p1752_p8  ;;  %s27_s29 = ssub.s32 %s1677_s18, %s1765_s27 }
  0x14   : > { %s1534_s30 = scalar_lea.vmem %s164_s25, 2048  ;;  %p1542_p3 = scmp.lt.s32.totalorder %s164_s25, %s164_s25 }
  0x15   : > { %p1760_p10 = pnand %p1467_p9, %p2319_p1  ;;  %p1535_p12 = scmp.ne.s32.totalorder %s164_s25, %s1534_s30 }
  0x16   : > { %p1543_p5 = scmp.lt.s32.totalorder %s1534_s30, %s1534_s30 }
  0x17   : > { %p1525_p11 = pneg %p1760_p10 }
  0x18   : > { %p1544_p7 = por %p1543_p5, %p1542_p3 }
  0x19   : > { %p1537_p13 = pnand %p1535_p12, %p1525_p11 }
  0x1b   : > { %p1538_p0 = pneg %p1537_p13 }
  0x1d   : > { %p1545_p2 = pnand %p1544_p7, %p1538_p0 }
  0x1f   : > { %1548 = shalt.err (!%p1545_p2)
}
  0x20   : > { %s2315_s5 = smov 128   ;;  %s2317_s6 = smov 8  }
  0x21   : > { %s2330_s3 = sld [smem:[#allocation15_spill]]  ;;  %p28_p2 = scmp.eq.s32.totalorder %s27_s29, 0 }
  0x22   : > { %p37_p9 = scmp.ne.s32.totalorder %s1673_s17, %s1669_s16  ;;  %p38_p11 = scmp.eq.s32.totalorder %s1677_s18, 0 }
  0x23   : > { %p1483_p12 = scmp.lt.s32.totalorder %s1677_s18, 4  ;;  %p2332_p0 = scmp.eq.s32.totalorder %s1733_s19, 3 }
  0x24   : > { %s1785_s9 = scalar_select %p28_p2, %s1673_s17, %s30_s28  }
  0x25   : > { %p39_p13 = por %p38_p11, %p37_p9  ;;  %p1789_p3 = por %p2332_p0, %p37_p9 }
  0x26   : > { %2331 = sst [smem:[#allocation13_spill]] %s1785_s9  ;;  %s177_s11 = sand.u32 1, %s1673_s17  }
  0x27   : > { %1470 = dma.hbm_to_vmem [thread:$0]  (!%p1760_p10), %s2330_s3, 2048, %s164_s25, [#allocation6], %s2315_s5, %s2315_s5, %s2317_s6  }
  0x28   : > { %s2333_s10 = scalar_select %p1789_p3, 1, 0 }
  0x29   : > { %s1136_s12 = sshll.u32 %s1677_s18, 8  ;;  %s1795_s13 = sshll.u32 %s177_s11, 4 }
  0x2a   : > { %s2334_s0 = sld [smem:[#allocation14_spill]]  ;;  %s181_s25 = scalar_lea.vmem [#allocation2], %s1795_s13 }
  0x2b   : > { %s188_s26 = sshll.u32 %s181_s25, 4  ;;  %p1803_p10 = pnand %p1483_p12, %p39_p13  ;;  %s1807_s26 = int_to_ptr.vmem [resolvable:$true] %s188_s26 }
  0x2c   : > { %s1812_s7 = scalar_lea.hbm %s2311_s1, %s1136_s12  ;;  %s1814_s8 = scalar_lea.sflag [#allocation3], %s177_s11 }
  0x2d   : > { %p1551_p7 = pneg %p1803_p10 }
  0x30   : > { %s1800_s24 = scalar_lea.hbm %s2334_s0, %s1136_s12  ;;  %s1554_s5 = scalar_lea.hbm %s2334_s0, 1024 }
  0x31   : > { %s1549_s14 = scalar_lea.hbm %s1800_s24, 256  ;;  %p1555_p11 = scmp.lt.s32.totalorder %s1800_s24, %s2334_s0 }
  0x32   : > { %p1550_p5 = scmp.ne.s32.totalorder %s1800_s24, %s1549_s14  ;;  %p1556_p12 = scmp.lt.s32.totalorder %s1554_s5, %s1549_s14 }
  0x34   : > { %p1552_p2 = pnand %p1551_p7, %p1550_p5  ;;  %p1557_p13 = por %p1556_p12, %p1555_p11 }
  0x36   : > { %p1553_p9 = pneg %p1552_p2 }
  0x38   : > { %p1558_p0 = pnand %p1557_p13, %p1553_p9 }
  0x3a   : > { %1561 = shalt.err (!%p1558_p0)
}
  0x3b   : > { %s1562_s11 = scalar_lea.vmem %s1807_s26, 256  ;;  %s1682_s12 = smov [#allocation2]  }
  0x3c   : > { %p1563_p1 = scmp.ne.s32.totalorder %s1807_s26, %s1562_s11  ;;  %s1567_s29 = sshll.u32 %s1682_s12, 4  ;;  %s1568_s29 = int_to_ptr.vmem [resolvable:$false] %s1567_s29 }
  0x3d   : > { %s1569_s30 = scalar_lea.vmem %s1568_s29, 512  ;;  %p1570_p6 = scmp.lt.s32.totalorder %s1807_s26, %s1568_s29 }
  0x3e   : > { %p1565_p5 = pnand %p1563_p1, %p1551_p7  ;;  %p1571_p3 = scmp.lt.s32.totalorder %s1569_s30, %s1562_s11 }
  0x40   : > { %p1566_p2 = pneg %p1565_p5  ;;  %p1572_p4 = por %p1571_p3, %p1570_p6 }
  0x42   : > { %p1573_p11 = pnand %p1572_p4, %p1566_p2 }
  0x44   : > { %1576 = shalt.err (!%p1573_p11)
}
  0x45   : > { %s2336_s3 = smov 8   ;;  %s2337_s5 = smov 128  }
  0x46   : > { %1474 = dma.hbm_to_vmem [thread:$0]  (!%p1803_p10), %s1800_s24, 256, %s1807_s26, %s1814_s8, %s2337_s5, %s2337_s5, %s2336_s3  }
  0x47   : > { %s202_s6 = scalar_lea.vmem [#allocation5], %s1795_s13  ;;  %s198_s20 = sand.u32 1, %s1677_s18  }
  0x48   : > { %s209_s14 = sshll.u32 %s202_s6, 4  ;;  %s199_s25 = scalar_lea.sflag [#allocation6], %s198_s20  ;;  %s1846_s14 = int_to_ptr.vmem [resolvable:$true] %s209_s14 }
  0x49   : > { %s1577_s11 = scalar_lea.hbm %s1812_s7, 256  ;;  %s1582_s30 = scalar_lea.hbm %s2311_s1, 1024 }
  0x4a   : > { %p1578_p1 = scmp.ne.s32.totalorder %s1812_s7, %s1577_s11  ;;  %p1583_p3 = scmp.lt.s32.totalorder %s1812_s7, %s2311_s1 }
  0x4b   : > { %p1584_p9 = scmp.lt.s32.totalorder %s1582_s30, %s1577_s11 }
  0x4c   : > { %p1580_p4 = pnand %p1578_p1, %p1551_p7 }
  0x4d   : > { %p1585_p12 = por %p1584_p9, %p1583_p3 }
  0x4e   : > { %p1581_p6 = pneg %p1580_p4 }
  0x50   : > { %p1586_p13 = pnand %p1585_p12, %p1581_p6 }
  0x52   : > { %1589 = shalt.err (!%p1586_p13)
}
  0x53   : > { %s1590_s13 = scalar_lea.vmem %s1846_s14, 256  ;;  %s1683_s24 = smov [#allocation5]  }
  0x54   : > { %p1591_p0 = scmp.ne.s32.totalorder %s1846_s14, %s1590_s13  ;;  %s1595_s26 = sshll.u32 %s1683_s24, 4  ;;  %s1596_s26 = int_to_ptr.vmem [resolvable:$false] %s1595_s26 }
  0x55   : > { %s1597_s8 = scalar_lea.vmem %s1596_s26, 512  ;;  %p1598_p11 = scmp.lt.s32.totalorder %s1846_s14, %s1596_s26 }
  0x56   : > { %p1593_p5 = pnand %p1591_p0, %p1551_p7  ;;  %p1599_p1 = scmp.lt.s32.totalorder %s1597_s8, %s1590_s13 }
  0x58   : > { %p1594_p2 = pneg %p1593_p5  ;;  %p1600_p4 = por %p1599_p1, %p1598_p11 }
  0x5a   : > { %p1601_p3 = pnand %p1600_p4, %p1594_p2 }
  0x5c   : > { %1604 = shalt.err (!%p1601_p3)
}
  0x5d   : > { %1477 = dma.hbm_to_vmem [thread:$0]  (!%p1803_p10), %s1812_s7, 256, %s1846_s14, %s199_s25, %s2337_s5, %s2337_s5, %s2336_s3  }
  0x5e   : > { %221 = sbr.rel (%p1752_p8) target bundleno = 433 (0x1b1), region = 36  ;;  %s1876_s0 = sand.u32 (!%p1752_p8), 1, %s1669_s16  }
  0x5f   : > { %s1879_s9 = sshll.u32 (!%p1752_p8), %s1876_s0, 4  ;;  %s224_s6 = scalar_lea.sflag (!%p1752_p8), [#allocation3], %s1876_s0 }
  0x60   : > { %s227_s28 = scalar_lea.vmem (!%p1752_p8), [#allocation2], %s1879_s9  ;;  %p2338_p7 = scmp.ne.s32.totalorder (!%p1752_p8), %s2326_s21, 0 }
  0x63   : > { %1648 = dma.done.wait (%p2338_p7), %s224_s6, 256  }
  0x64   : > { %1650 = vsyncadd (%p2338_p7), %s224_s6, 4294967040  ;;  %s232_s23 = sand.u32 1, %s1733_s19   ;;  %s236_s3 = scalar_lea.vmem [#allocation5], %s1879_s9 }
  0x65   : > { %s233_s7 = scalar_lea.sflag [#allocation6], %s232_s23 }
  0x66   : > { %1652 = dma.done.wait (%p2338_p7), %s233_s7, 256  }
  0x67   : > { %1654 = vsyncadd (%p2338_p7), %s233_s7, 4294967040  ;;  %p2339_p8 = scmp.eq.s32.totalorder %s1733_s19, 0 }
  0x69   : > { %1656 = dma.done.wait (%p2339_p8), [#allocation6], 2048   ;;  %p2340_p10 = pmov %p2339_p8 }
  0x6a   : > { %v300_v0 = vld [vmem:[#allocation7 + $0x78] sm:$0xff]  ;;  %v299_v1 = vld [vmem:[#allocation7 + $0x70] sm:$0xff]  ;;  %v298_v2 = vld [vmem:[#allocation7 + $0x68] sm:$0xff]  ;;  %s269_s25 = scalar_lea.vmem [#allocation8], %s1879_s9  ;;  %s1138_s12 = sshll.u32 %s1733_s19, 8 }
  0x6b   : > { %1658 = vsyncadd (%p2340_p10), [#allocation6], 4294965248  ;;  %v1897_v3 = vand.u32 4294901760, %v300_v0  ;;  %v1899_v4 = vand.u32 4294901760, %v299_v1  ;;  %v1901_v5 = vand.u32 4294901760, %v298_v2  ;;  %v297_v6 = vld [vmem:[#allocation7 + $0x60] sm:$0xff]  ;;  %s2268_s13 = scalar_lea.hbm %s2314_s4, %s1138_s12 }
  0x6c   : > { %v296_v7 = vld [vmem:[#allocation7 + $0x58] sm:$0xff]  ;;  %v295_v8 = vld [vmem:[#allocation7 + $0x50] sm:$0xff]  ;;  %v1903_v9 = vand.u32 4294901760, %v297_v6  ;;  %v294_v12 = vld [vmem:[#allocation7 + $0x48] sm:$0xff]  ;;  %s1009_s11 = sshll.u32 %s269_s25, 4  ;;  %s996_s24 = scalar_lea.sflag [#allocation4], %s1876_s0  ;;  %s2263_s11 = int_to_ptr.vmem [resolvable:$true] %s1009_s11 }
  0x6d   : > { %v1905_v10 = vand.u32 4294901760, %v296_v7  ;;  %v1907_v11 = vand.u32 4294901760, %v295_v8  ;;  %v293_v13 = vld [vmem:[#allocation7 + $0x40] sm:$0xff]  ;;  %1247 = vmatprep.subr.mxu0 %v1897_v3  ;;  %v1911_v14 = vsub.f32 %v300_v0, %v1897_v3  ;;  %v1914_v15 = vsub.f32 %v299_v1, %v1899_v4  ;;  %v292_v18 = vld [vmem:[#allocation7 + $0x38] sm:$0xff]  ;;  %v291_v28 = vld [vmem:[#allocation7 + $0x30] sm:$0xff]  ;;  %s1605_s26 = scalar_lea.vmem %s2263_s11, 256 }
  0x6e   : > { %v1916_v16 = vand.u32 4294901760, %v294_v12  ;;  %v1919_v17 = vsub.f32 %v298_v2, %v1901_v5  ;;  %1248 = vmatpush3.msra.mxu0 %v1897_v3  ;;  %v1923_v19 = vsub.f32 %v297_v6, %v1903_v9  ;;  %v1938_v24 = vand.u32 4294901760, %v293_v13  ;;  %v290_v35 = vld [vmem:[#allocation7 + $0x28] sm:$0xff]  ;;  %v289_v42 = vld [vmem:[#allocation7 + $0x20] sm:$0xff]  ;;  %v288_v50 = vld [vmem:[#allocation7 + $0x18] sm:$0xff]  ;;  %p1606_p6 = scmp.ne.s32.totalorder %s2263_s11, %s1605_s26  ;;  %p2343_p9 = scmp.ne.s32.totalorder %s2333_s10, 0 }
  0x6f   : > { %v1926_v20 = vsub.f32 %v296_v7, %v1905_v10  ;;  %1249 = vmatprep.subr.mxu0 %v1899_v4  ;;  %v1930_v21 = vand.u32 4294901760, %v1911_v14  ;;  %v1933_v22 = vand.u32 4294901760, %v1914_v15  ;;  %v1944_v26 = vand.u32 4294901760, %v292_v18  ;;  %v275_v47 = vld [vmem:[%s236_s3] sm:$0xff]  ;;  %v276_v51 = vld [vmem:[%s236_s3 + $0x8] sm:$0xff]  ;;  %s1684_s19 = smov [#allocation8]  }
  0x70   : > { %v1936_v23 = vand.u32 4294901760, %v1919_v17  ;;  %1250 = vmatpush3.msra.mxu0 %v1899_v4  ;;  %v1942_v25 = vand.u32 4294901760, %v1923_v19  ;;  %v1950_v29 = vsub.f32 %v295_v8, %v1907_v11  ;;  %v1960_v33 = vsub.f32 %v294_v12, %v1916_v16  ;;  %v1129_v48 = vld [vmem:[%s2312_s2] ss:$0 sm:$0xff]  ;;  %v287_v61 = vld [vmem:[#allocation7 + $0x10] sm:$0xff]  ;;  %v286_v7 = vld [vmem:[#allocation7 + $0x8] sm:$0xff]  ;;  %p1607_p12 = pnand %p1606_p6, %p2343_p9 }
  0x71   : > { %v1947_v27 = vand.u32 4294901760, %v1926_v20  ;;  %1251 = vmatprep.subr.mxu0 %v1901_v5  ;;  %v406_v30 = vsub.f32 %v1911_v14, %v1930_v21  ;;  %v413_v31 = vsub.f32 %v1914_v15, %v1933_v22  ;;  %v1969_v39 = vand.u32 4294901760, %v291_v28  ;;  %s1609_s8 = sshll.u32 %s1684_s19, 4  ;;  %s1610_s8 = int_to_ptr.vmem [resolvable:$false] %s1609_s8 }
  0x72   : > { %v420_v32 = vsub.f32 %v1919_v17, %v1936_v23  ;;  %1252 = vmatpush3.msra.mxu0 %v1901_v5  ;;  %v1964_v34 = vand.u32 4294901760, %v1950_v29  ;;  %v427_v38 = vsub.f32 %v1923_v19, %v1942_v25  ;;  %v1975_v41 = vand.u32 4294901760, %v1960_v33  ;;  %p1608_p13 = pneg %p1607_p12  ;;  %s1611_s9 = scalar_lea.vmem %s1610_s8, 512 }
  0x73   : > { %1253 = vmatprep.subr.mxu0 %v1903_v9  ;;  %v407_v36 = vand.u32 4294901760, %v406_v30  ;;  %v414_v37 = vand.u32 4294901760, %v413_v31  ;;  %v434_v40 = vsub.f32 %v1926_v20, %v1947_v27  ;;  %v1978_v43 = vsub.f32 %v293_v13, %v1938_v24  ;;  %v285_v31 = vld [vmem:[#allocation7] sm:$0xff]  ;;  %p1612_p0 = scmp.lt.s32.totalorder %s2263_s11, %s1610_s8  ;;  %p1613_p5 = scmp.lt.s32.totalorder %s1611_s9, %s1605_s26 }
  0x74   : > { %1254 = vmatpush3.msra.mxu0 %v1903_v9  ;;  %v421_v44 = vand.u32 4294901760, %v420_v32  ;;  %v1981_v45 = vand.u32 4294901760, %v290_v35  ;;  %v1984_v46 = vsub.f32 %v292_v18, %v1944_v26  ;;  %v441_v49 = vsub.f32 %v1950_v29, %v1964_v34 }
  0x75   : > { %1255 = vmatprep.subr.mxu0 %v1905_v10  ;;  %1282 = vmatprep.subr.mxu1 %v407_v36  ;;  %v428_v52 = vand.u32 4294901760, %v427_v38  ;;  %v1997_v53 = vand.u32 4294901760, %v289_v42  ;;  %v2000_v54 = vand.u32 4294901760, %v1978_v43  ;;  %v2003_v55 = vsub.f32 %v291_v28, %v1969_v39  ;;  %p1614_p2 = por %p1613_p5, %p1612_p0 }
  0x76   : > { %1256 = vmatpush3.msra.mxu0 %v1905_v10  ;;  %1283 = vmatpush3.msra.mxu1 %v407_v36  ;;  %v435_v56 = vand.u32 4294901760, %v434_v40  ;;  %v448_v57 = vsub.f32 %v1960_v33, %v1975_v41  ;;  %v283_v58 = vmul.f32 %v1129_v48, %v275_v47  ;;  %v2009_v59 = vand.u32 4294901760, %v288_v50 }
  0x77   : > { %1257 = vmatprep.subr.mxu0 %v1907_v11  ;;  %1284 = vmatprep.subr.mxu1 %v414_v37  ;;  %v2012_v60 = vand.u32 4294901760, %v1984_v46  ;;  %v2015_v62 = vsub.f32 %v290_v35, %v1981_v45  ;;  %v284_v63 = vmul.f32 %v1129_v48, %v276_v51  ;;  %v442_v0 = vand.u32 4294901760, %v441_v49  ;;  %p1615_p11 = pnand %p1614_p2, %p1608_p13 }
  0x78   : > { %1258 = vmatpush3.msra.mxu0 %v1907_v11  ;;  %1285 = vmatpush3.msra.mxu1 %v414_v37  ;;  %v2018_v1 = vand.u32 4294901760, %v283_v58  ;;  %v455_v2 = vsub.f32 %v1978_v43, %v2000_v54  ;;  %v2024_v6 = vand.u32 4294901760, %v2003_v55  ;;  %v2027_v8 = vsub.f32 %v289_v42, %v1997_v53 }
  0x79   : > { %1259 = vmatprep.subr.mxu0 %v1916_v16  ;;  %1286 = vmatprep.subr.mxu1 %v421_v44  ;;  %v2029_v12 = vand.u32 4294901760, %v284_v63  ;;  %v449_v13 = vand.u32 4294901760, %v448_v57  ;;  %v2032_v18 = vand.u32 4294901760, %v287_v61  ;;  %v462_v28 = vsub.f32 %v1984_v46, %v2012_v60 }
  0x7a   : > { %1260 = vmatpush3.msra.mxu0 %v1916_v16  ;;  %1287 = vmatpush3.msra.mxu1 %v421_v44  ;;  %v2038_v30 = vand.u32 4294901760, %v2015_v62  ;;  %v2041_v32 = vsub.f32 %v283_v58, %v2018_v1  ;;  %v2044_v35 = vsub.f32 %v288_v50, %v2009_v59  ;;  %v2047_v36 = vand.u32 4294901760, %v286_v7 }
  0x7b   : > { %1261 = vmatprep.subr.mxu0 %v1938_v24  ;;  %1288 = vmatprep.subr.mxu1 %v428_v52  ;;  %v2050_v37 = vsub.f32 %v284_v63, %v2029_v12  ;;  %v456_v38 = vand.u32 4294901760, %v455_v2  ;;  %v469_v40 = vsub.f32 %v2003_v55, %v2024_v6  ;;  %v2056_v42 = vand.u32 4294901760, %v2027_v8 }
  0x7c   : > { %1262 = vmatpush3.msra.mxu0 %v1938_v24  ;;  %1289 = vmatpush3.msra.mxu1 %v428_v52  ;;  %v2059_v44 = vand.u32 4294901760, %v285_v31  ;;  %v2062_v47 = vsub.f32 %v287_v61, %v2032_v18  ;;  %v463_v48 = vand.u32 4294901760, %v462_v28  ;;  %v476_v49 = vsub.f32 %v2015_v62, %v2038_v30 }
  0x7d   : > { %1263 = vmatprep.subr.mxu0 %v1944_v26  ;;  %1290 = vmatprep.subr.mxu1 %v435_v56  ;;  %v2323_v50 = vand.u32 4294901760, %v2041_v32  ;;  %v2069_v51 = vand.u32 4294901760, %v2044_v35  ;;  %v2322_v52 = vand.u32 4294901760, %v2050_v37  ;;  %v470_v57 = vand.u32 4294901760, %v469_v40 }
  0x7e   : > { %1264 = vmatpush3.msra.mxu0 %v1944_v26  ;;  %1291 = vmatpush3.msra.mxu1 %v435_v56  ;;  %v2074_v56 = vsub.f32 %v286_v7, %v2047_v36  ;;  %v483_v58 = vsub.f32 %v2027_v8, %v2056_v42  ;;  %v2081_v61 = vand.u32 4294901760, %v2062_v47  ;;  %v2084_v63 = vsub.f32 %v285_v31, %v2059_v44 }
  0x7f   : > { %1265 = vmatprep.subr.mxu0 %v1969_v39  ;;  %1292 = vmatprep.subr.mxu1 %v442_v0  ;;  %v385_v2 = vsub.f32 %v2041_v32, %v2323_v50  ;;  %v490_v7 = vsub.f32 %v2044_v35, %v2069_v51 }
  0x80   : > { %1266 = vmatpush3.msra.mxu0 %v1969_v39  ;;  %1293 = vmatpush3.msra.mxu1 %v442_v0  ;;  %v477_v0 = vand.u32 4294901760, %v476_v49  ;;  %v2097_v28 = vand.u32 4294901760, %v2074_v56  ;;  %v484_v31 = vand.u32 4294901760, %v483_v58  ;;  %v2104_v40 = vand.u32 4294901760, %v2084_v63 }
  0x81   : > { %1267 = vmatprep.subr.mxu0 %v1981_v45  ;;  %1294 = vmatprep.subr.mxu1 %v449_v13  ;;  %v491_v49 = vand.u32 4294901760, %v490_v7 }
  0x82   : > { %1268 = vmatpush3.msra.mxu0 %v1981_v45  ;;  %1295 = vmatpush3.msra.mxu1 %v449_v13  ;;  %v395_v13 = vsub.f32 %v2050_v37, %v2322_v52  ;;  %v504_v58 = vsub.f32 %v2074_v56, %v2097_v28  ;;  %v511_v50 = vsub.f32 %v2084_v63, %v2104_v40 }
  0x83   : > { %1269 = vmatprep.subr.mxu0 %v1997_v53  ;;  %1296 = vmatprep.subr.mxu1 %v456_v38 }
  0x84   : > { %1270 = vmatpush3.msra.mxu0 %v1997_v53  ;;  %1297 = vmatpush3.msra.mxu1 %v456_v38  ;;  %v497_v38 = vsub.f32 %v2062_v47, %v2081_v61  ;;  %v396_v52 = vand.u32 4294901760, %v395_v13 }
  0x85   : > { %1271 = vmatprep.subr.mxu0 %v2009_v59  ;;  %1298 = vmatprep.subr.mxu1 %v463_v48 }
  0x86   : > { %1272 = vmatpush3.msra.mxu0 %v2009_v59  ;;  %1299 = vmatpush3.msra.mxu1 %v463_v48  ;;  %v386_v48 = vand.u32 4294901760, %v385_v2  ;;  %v512_v2 = vand.u32 4294901760, %v511_v50 }
  0x87   : > { %1273 = vmatprep.subr.mxu0 %v2032_v18  ;;  %1300 = vmatprep.subr.mxu1 %v470_v57 }
  0x88   : > { %1274 = vmatpush3.msra.mxu0 %v2032_v18  ;;  %1301 = vmatpush3.msra.mxu1 %v470_v57  ;;  %v498_v57 = vand.u32 4294901760, %v497_v38 }
  0x89   : > { %1275 = vmatprep.subr.mxu0 %v2047_v36  ;;  %1302 = vmatprep.subr.mxu1 %v477_v0 }
  0x8a   : > { %1276 = vmatpush3.msra.mxu0 %v2047_v36  ;;  %1303 = vmatpush3.msra.mxu1 %v477_v0  ;;  %v505_v0 = vand.u32 4294901760, %v504_v58 }
  0x8b   : > { %1277 = vmatprep.subr.mxu0 %v2059_v44  ;;  %1304 = vmatprep.subr.mxu1 %v484_v31 }
  0x8c   : > { %1278 = vmatpush3.msra.mxu0 %v2059_v44  ;;  %1305 = vmatpush3.msra.mxu1 %v484_v31 }
  0x8d   : > { %1279 = vmatprep.mubr.f32.mxu0 %v386_v48  ;;  %1306 = vmatprep.subr.mxu1 %v491_v49 }
  0x8e   : > { %1317 = vmatprep.subr.mxu0 %v1911_v14  ;;  %1280 = vmatmul.mubr.f32.vlgmr.msra.gmra.mxu0 %v396_v52 }
  0x8f   : > { %1307 = vmatpush3.msra.mxu1 %v491_v49  ;;  %1318 = vmatpush3.msra.mxu0 %v1911_v14  ;;  %v2341_v14 = vand.u32 4294901760, %v2041_v32 }
  0x90   : > { %1308 = vmatprep.subr.mxu1 %v498_v57  ;;  %1319 = vmatprep.subr.mxu0 %v1914_v15 }
  0x91   : > { %1309 = vmatpush3.msra.mxu1 %v498_v57  ;;  %1320 = vmatpush3.msra.mxu0 %v1914_v15  ;;  %v2342_v15 = vand.u32 4294901760, %v2050_v37 }
  0x92   : > { %1310 = vmatprep.subr.mxu1 %v505_v0  ;;  %1321 = vmatprep.subr.mxu0 %v1919_v17 }
  0x93   : > { %1311 = vmatpush3.msra.mxu1 %v505_v0  ;;  %1322 = vmatpush3.msra.mxu0 %v1919_v17 }
  0x94   : > { %1312 = vmatprep.subr.mxu1 %v512_v2  ;;  %1323 = vmatprep.subr.mxu0 %v1923_v19 }
  0x95   : > { %1313 = vmatpush3.msra.mxu1 %v512_v2  ;;  %1314 = vmatprep.mubr.f32.mxu1 %v2018_v1 }
  0x96   : > { %1324 = vmatpush3.msra.mxu0 %v1923_v19  ;;  %1315 = vmatmul.mubr.f32.vlgmr.msra.gmra.mxu1 %v2029_v12 }
  0x97   : > { %1325 = vmatprep.subr.mxu0 %v1926_v20  ;;  %1352 = vmatprep.subr.mxu1 %v1897_v3 }
  0x98   : > { %1326 = vmatpush3.msra.mxu0 %v1926_v20  ;;  %1353 = vmatpush3.msra.mxu1 %v1897_v3 }
  0x99   : > { %1327 = vmatprep.subr.mxu0 %v1950_v29  ;;  %1354 = vmatprep.subr.mxu1 %v1899_v4 }
  0x9a   : > { %1328 = vmatpush3.msra.mxu0 %v1950_v29  ;;  %1355 = vmatpush3.msra.mxu1 %v1899_v4  ;;  %v274_v29 = vld [vmem:[%s227_s28 + $0x8] sm:$0xff] }
  0x9b   : > { %1329 = vmatprep.subr.mxu0 %v1960_v33  ;;  %1356 = vmatprep.subr.mxu1 %v1901_v5 }
  0x9c   : > { %1330 = vmatpush3.msra.mxu0 %v1960_v33  ;;  %1357 = vmatpush3.msra.mxu1 %v1901_v5 }
  0x9d   : > { %1331 = vmatprep.subr.mxu0 %v1978_v43  ;;  %1358 = vmatprep.subr.mxu1 %v1903_v9 }
  0x9e   : > { %1332 = vmatpush3.msra.mxu0 %v1978_v43  ;;  %1359 = vmatpush3.msra.mxu1 %v1903_v9  ;;  %v273_v43 = vld [vmem:[%s227_s28] sm:$0xff] }
  0x9f   : > { %1333 = vmatprep.subr.mxu0 %v1984_v46  ;;  %1360 = vmatprep.subr.mxu1 %v1905_v10 }
  0xa0   : > { %1334 = vmatpush3.msra.mxu0 %v1984_v46  ;;  %1361 = vmatpush3.msra.mxu1 %v1905_v10 }
  0xa1   : > { %1335 = vmatprep.subr.mxu0 %v2003_v55  ;;  %1362 = vmatprep.subr.mxu1 %v1907_v11 }
  0xa2   : > { %1336 = vmatpush3.msra.mxu0 %v2003_v55  ;;  %1363 = vmatpush3.msra.mxu1 %v1907_v11 }
  0xa3   : > { %1337 = vmatprep.subr.mxu0 %v2015_v62  ;;  %1364 = vmatprep.subr.mxu1 %v1916_v16 }
  0xa4   : > { %1338 = vmatpush3.msra.mxu0 %v2015_v62  ;;  %1365 = vmatpush3.msra.mxu1 %v1916_v16 }
  0xa5   : > { %1339 = vmatprep.subr.mxu0 %v2027_v8  ;;  %1366 = vmatprep.subr.mxu1 %v1938_v24 }
  0xa6   : > { %1340 = vmatpush3.msra.mxu0 %v2027_v8  ;;  %1367 = vmatpush3.msra.mxu1 %v1938_v24 }
  0xa7   : > { %1341 = vmatprep.subr.mxu0 %v2044_v35  ;;  %1368 = vmatprep.subr.mxu1 %v1944_v26 }
  0xa8   : > { %1342 = vmatpush3.msra.mxu0 %v2044_v35  ;;  %1369 = vmatpush3.msra.mxu1 %v1944_v26 }
  0xa9   : > { %1343 = vmatprep.subr.mxu0 %v2062_v47  ;;  %1370 = vmatprep.subr.mxu1 %v1969_v39 }
  0xaa   : > { %1344 = vmatpush3.msra.mxu0 %v2062_v47  ;;  %1371 = vmatpush3.msra.mxu1 %v1969_v39 }
  0xab   : > { %1345 = vmatprep.subr.mxu0 %v2074_v56  ;;  %1372 = vmatprep.subr.mxu1 %v1981_v45 }
  0xac   : > { %1346 = vmatpush3.msra.mxu0 %v2074_v56  ;;  %1373 = vmatpush3.msra.mxu1 %v1981_v45 }
  0xad   : > { %1347 = vmatprep.subr.mxu0 %v2084_v63  ;;  %1374 = vmatprep.subr.mxu1 %v1997_v53 }
  0xae   : > { %1348 = vmatpush3.msra.mxu0 %v2084_v63  ;;  %1349 = vmatprep.mubr.f32.mxu0 %v2041_v32 }
  0xaf   : > { %1375 = vmatpush3.msra.mxu1 %v1997_v53  ;;  %1350 = vmatmul.mubr.f32.vlgmr.msra.gmra.mxu0 %v2050_v37 }
  0xb0   : > { %1376 = vmatprep.subr.mxu1 %v2009_v59  ;;  %1387 = vmatprep.subr.mxu0 %v1930_v21 }
  0xb1   : > { %1377 = vmatpush3.msra.mxu1 %v2009_v59  ;;  %1388 = vmatpush3.msra.mxu0 %v1930_v21 }
  0xb2   : > { %1378 = vmatprep.subr.mxu1 %v2032_v18  ;;  %1389 = vmatprep.subr.mxu0 %v1933_v22 }
  0xb3   : > { %1379 = vmatpush3.msra.mxu1 %v2032_v18  ;;  %1390 = vmatpush3.msra.mxu0 %v1933_v22 }
  0xb4   : > { %1380 = vmatprep.subr.mxu1 %v2047_v36  ;;  %1391 = vmatprep.subr.mxu0 %v1936_v23 }
  0xb5   : > { %1381 = vmatpush3.msra.mxu1 %v2047_v36  ;;  %1392 = vmatpush3.msra.mxu0 %v1936_v23 }
  0xb6   : > { %1382 = vmatprep.subr.mxu1 %v2059_v44  ;;  %1393 = vmatprep.subr.mxu0 %v1942_v25 }
  0xb7   : > { %1383 = vmatpush3.msra.mxu1 %v2059_v44  ;;  %1384 = vmatprep.mubr.f32.mxu1 %v2341_v14 }
  0xb8   : > { %1394 = vmatpush3.msra.mxu0 %v1942_v25  ;;  %1385 = vmatmul.mubr.f32.vlgmr.msra.gmra.mxu1 %v2342_v15 }
  0xb9   : > { %1395 = vmatprep.subr.mxu0 %v1947_v27  ;;  %1422 = vmatprep.subr.mxu1 %v1897_v3 }
  0xba   : > { %1396 = vmatpush3.msra.mxu0 %v1947_v27  ;;  %1423 = vmatpush3.msra.mxu1 %v1897_v3 }
  0xbb   : > { %1397 = vmatprep.subr.mxu0 %v1964_v34  ;;  %1424 = vmatprep.subr.mxu1 %v1899_v4 }
  0xbc   : > { %1398 = vmatpush3.msra.mxu0 %v1964_v34  ;;  %1425 = vmatpush3.msra.mxu1 %v1899_v4 }
  0xbd   : > { %1399 = vmatprep.subr.mxu0 %v1975_v41  ;;  %1426 = vmatprep.subr.mxu1 %v1901_v5 }
  0xbe   : > { %1400 = vmatpush3.msra.mxu0 %v1975_v41  ;;  %1427 = vmatpush3.msra.mxu1 %v1901_v5  ;;  %v1130_v41 = vld [vmem:[%s2312_s2 + $0x1] ss:$0 sm:$0xff] }
  0xbf   : > { %1401 = vmatprep.subr.mxu0 %v2000_v54  ;;  %1428 = vmatprep.subr.mxu1 %v1903_v9 }
  0xc0   : > { %1402 = vmatpush3.msra.mxu0 %v2000_v54  ;;  %1429 = vmatpush3.msra.mxu1 %v1903_v9 }
  0xc1   : > { %1403 = vmatprep.subr.mxu0 %v2012_v60  ;;  %1430 = vmatprep.subr.mxu1 %v1905_v10 }
  0xc2   : > { %1404 = vmatpush3.msra.mxu0 %v2012_v60  ;;  %1431 = vmatpush3.msra.mxu1 %v1905_v10 }
  0xc3   : > { %1405 = vmatprep.subr.mxu0 %v2024_v6  ;;  %1432 = vmatprep.subr.mxu1 %v1907_v11 }
  0xc4   : > { %1406 = vmatpush3.msra.mxu0 %v2024_v6  ;;  %1433 = vmatpush3.msra.mxu1 %v1907_v11 }
  0xc5   : > { %1407 = vmatprep.subr.mxu0 %v2038_v30  ;;  %1434 = vmatprep.subr.mxu1 %v1916_v16 }
  0xc6   : > { %1408 = vmatpush3.msra.mxu0 %v2038_v30  ;;  %1435 = vmatpush3.msra.mxu1 %v1916_v16 }
  0xc7   : > { %1409 = vmatprep.subr.mxu0 %v2056_v42  ;;  %1436 = vmatprep.subr.mxu1 %v1938_v24 }
  0xc8   : > { %1410 = vmatpush3.msra.mxu0 %v2056_v42  ;;  %1437 = vmatpush3.msra.mxu1 %v1938_v24 }
  0xc9   : > { %1411 = vmatprep.subr.mxu0 %v2069_v51  ;;  %1438 = vmatprep.subr.mxu1 %v1944_v26 }
  0xca   : > { %1412 = vmatpush3.msra.mxu0 %v2069_v51  ;;  %1439 = vmatpush3.msra.mxu1 %v1944_v26 }
  0xcb   : > { %1413 = vmatprep.subr.mxu0 %v2081_v61  ;;  %1440 = vmatprep.subr.mxu1 %v1969_v39 }
  0xcc   : > { %1414 = vmatpush3.msra.mxu0 %v2081_v61  ;;  %1441 = vmatpush3.msra.mxu1 %v1969_v39 }
  0xcd   : > { %1415 = vmatprep.subr.mxu0 %v2097_v28  ;;  %1442 = vmatprep.subr.mxu1 %v1981_v45 }
  0xce   : > { %1416 = vmatpush3.msra.mxu0 %v2097_v28  ;;  %1443 = vmatpush3.msra.mxu1 %v1981_v45 }
  0xcf   : > { %1417 = vmatprep.subr.mxu0 %v2104_v40  ;;  %1444 = vmatprep.subr.mxu1 %v1997_v53 }
  0xd0   : > { %1418 = vmatpush3.msra.mxu0 %v2104_v40  ;;  %1419 = vmatprep.mubr.f32.mxu0 %v2018_v1 }
  0xd1   : > { %1445 = vmatpush3.msra.mxu1 %v1997_v53  ;;  %1420 = vmatmul.mubr.f32.vlgmr.msra.gmra.mxu0 %v2029_v12 }
  0xd2   : > { %1446 = vmatprep.subr.mxu1 %v2009_v59  ;;  %1454 = vmatprep.mubr.f32.mxu1 %v2018_v1 }
  0xd3   : > { %1447 = vmatpush3.msra.mxu1 %v2009_v59 }
  0xd4   : > { %1448 = vmatprep.subr.mxu1 %v2032_v18 }
  0xd5   : > { %1449 = vmatpush3.msra.mxu1 %v2032_v18 }
  0xd6   : > { %1450 = vmatprep.subr.mxu1 %v2047_v36 }
  0xd7   : > { %1451 = vmatpush3.msra.mxu1 %v2047_v36 }
  0xd8   : > { %1452 = vmatprep.subr.mxu1 %v2059_v44 }
  0xd9   : > { %1453 = vmatpush3.msra.mxu1 %v2059_v44 }
  0xda   : > { %1455 = vmatmul.mubr.f32.vlgmr.msra.gmra.mxu1 %v2029_v12 }
 0x14e   : > { %v1281_v3 = vpop.f32.mrf.mxu0 }
 0x150   : > { %v388_v4 = vpop.f32.mrf.mxu0 }
 0x156   : > { %v1316_v5 = vpop.f32.mrf.mxu1 }
 0x157   : > { %v556_v17 = vadd.f32 %v1316_v5, %v1281_v3 }
 0x158   : > { %v549_v10 = vpop.f32.mrf.mxu1 }
 0x159   : > { %v550_v20 = vadd.f32 %v549_v10, %v388_v4 }
 0x16f   : > { %v1351_v9 = vpop.f32.mrf.mxu0 }
 0x170   : > { %v667_v21 = vadd.f32 %v1351_v9, %v556_v17 }
 0x171   : > { %v659_v11 = vpop.f32.mrf.mxu0 }
 0x172   : > { %v660_v23 = vadd.f32 %v659_v11, %v550_v20 }
 0x178   : > { %v1386_v16 = vpop.f32.mrf.mxu1 }
 0x179   : > { %v764_v24 = vadd.f32 %v1386_v16, %v667_v21 }
 0x17a   : > { %v755_v22 = vpop.f32.mrf.mxu1 }
 0x17b   : > { %v756_v26 = vadd.f32 %v755_v22, %v660_v23 }
 0x191   : > { %v1421_v19 = vpop.f32.mrf.mxu0 }
 0x192   : > { %v889_v27 = vadd.f32 %v1421_v19, %v764_v24 }
 0x193   : > { %v882_v25 = vpop.f32.mrf.mxu0 }
 0x194   : > { %v883_v34 = vadd.f32 %v882_v25, %v756_v26 }
 0x19a   : > { %v1456_v33 = vpop.f32.mrf.mxu1 }
 0x19b   : > { %v982_v39 = vadd.f32 %v1456_v33, %v889_v27 }
 0x19c   : > { %v975_v45 = vpop.f32.mrf.mxu1 }
 0x19d   : > { %v986_v46 = vmul.f32 %v982_v39, %v274_v29  ;;  %v976_v53 = vadd.f32 %v975_v45, %v883_v34 }
 0x19f   : > { %v992_v54 = vadd.f32 %v1130_v41, %v986_v46  ;;  %v985_v55 = vmul.f32 %v976_v53, %v273_v43 }
 0x1a1   : > { %994 = vst [vmem:[%s269_s25 + $0x8] sm:$0xff] %v992_v54  ;;  %v991_v59 = vadd.f32 %v1130_v41, %v985_v55 }
 0x1a3   : > { %993 = vst [vmem:[%s269_s25] sm:$0xff] %v991_v59 }
 0x1a4   : > { %1618 = shalt.err (!%p1615_p11)
}
 0x1a5   : > { %s1619_s6 = scalar_lea.hbm %s2268_s13, 256  ;;  %s1623_s7 = scalar_lea.hbm %s2314_s4, 1024 }
 0x1a6   : > { %p1620_p1 = scmp.ne.s32.totalorder %s2268_s13, %s1619_s6  ;;  %p1624_p7 = scmp.lt.s32.totalorder %s2268_s13, %s2314_s4 }
 0x1a7   : > { %p1625_p8 = scmp.lt.s32.totalorder %s1623_s7, %s1619_s6 }
 0x1a8   : > { %p1621_p4 = pnand %p1620_p1, %p2343_p9 }
 0x1a9   : > { %p1626_p10 = por %p1625_p8, %p1624_p7 }
 0x1aa   : > { %p1622_p3 = pneg %p1621_p4 }
 0x1ac   : > { %p1627_p6 = pnand %p1626_p10, %p1622_p3 }
 0x1ae   : > { %1630 = shalt.err (!%p1627_p6)
}
 0x1af   : > { %s1685_s5 = smov 128   ;;  %s1686_s14 = smov 8  }
 0x1b0   : > { %1465 = dma.vmem_to_hbm [thread:$0]  (%p2343_p9), %s2263_s11, 256, %s2268_s13, %s996_s24, %s1685_s5, %s1685_s5, %s1686_s14  }
 0x1b1 PF: > { %p1485_p12 = scmp.ge.s32.totalorder %s1677_s18, 2  ;;  %s1024_s20 = sand.u32 1, %s1665_s15  }
 0x1b2   : > { %p2344_p13 = scmp.ne.s32.totalorder %s2327_s22, 0  ;;  %s1025_s25 = scalar_lea.sflag [#allocation4], %s1024_s20 }
 0x1b4   : > { %p1479_p0 = pnand %p1485_p12, %p2344_p13 }
 0x1b6   : > { %p1480_p5 = pneg %p1479_p0 }
 0x1b8   : > { %1660 = dma.done.wait (%p1480_p5), %s1025_s25, 256  }
 0x1b9   : > { %1662 = vsyncadd (%p1480_p5), %s1025_s25, 4294967040  ;;  %s2345_s12 = sld [smem:[#allocation13_spill]]  ;;  %p20_p2 = scmp.ge.s32.totalorder %s1765_s27, 6  }
 0x1ba   : > { %s2346_s15 = smov %s1669_s16  ;;  %s2347_s16 = smov %s1673_s17 }
 0x1bb   : > { %s2349_s18 = smov %s1765_s27  ;;  %22 = sbr.rel (!%p20_p2) target bundleno = 10 (0xa), region = 98 }
 0x1bf   : > { %s2348_s17 = smov %s2345_s12 }
 0x1c0   :  { %1030 = vsyncpa [#allocation3], 1 }
 0x1c1   :  { %1032 = vsyncpa [#allocation3 + $0x1], 1 }
 0x1c2   :  { %1033 = vsyncpa [#allocation6], 1 }
 0x1c3   :  { %1035 = vsyncpa [#allocation6 + $0x1], 1 }
 0x1c4   :  { %1036 = vsyncpa [#allocation4], 1 }
 0x1c5   :  { %1038 = vsyncpa [#allocation4 + $0x1], 1 }

</bundles_post_ra>
